<compile_context>
chip_gen: v7x
topology: tpu7x:2x2x1
jax: 0.10.0
libtpu: 0.0.40
codegen_flags: <defaults>
</compile_context>

<pallas_src>
import functools

import jax
import jax.numpy as jnp
from jax.experimental import pallas as pl
from jax.experimental.pallas import tpu as pltpu

SMOOTH = 1e-10
LANES = 128
SUBLANES = 8


def _dice_partial_kernel(x_ref, t_ref, inter_ref, union_ref, *, tail_rows, ragged):
    """One grid step (c, b, s).

    x_ref, t_ref        : (1, 1, TR, L) tiles of pred / target.
    inter_ref, union_ref: (1, 1, 1, L) per-(class, batch) accumulators, resident
                          across the spatial ("arbitrary") grid axis s.
    """
    s = pl.program_id(2)

    @pl.when(s == 0)
    def _():
        inter_ref[...] = jnp.zeros_like(inter_ref)
        union_ref[...] = jnp.zeros_like(union_ref)

    def accumulate(mask_tail):
        pred = x_ref[0, 0].astype(jnp.float32)   # (TR, L); upcast keeps bf16 inputs cheap
        tgt = t_ref[0, 0].astype(jnp.float32)

        # torch.clamp(pred, smooth, 1 - smooth)
        pred = jnp.clip(pred, SMOOTH, 1.0 - SMOOTH)

        if mask_tail:
            # Only the last spatial block is ragged (block does not divide R);
            # rows >= tail_rows hold unspecified data, so zero them.  tail_rows
            # is a static python int -> one iota, one compare, two selects.
            row = jax.lax.broadcasted_iota(jnp.int32, pred.shape, 0)
            valid = row < tail_rows
            pred = jnp.where(valid, pred, 0.0)
            tgt = jnp.where(valid, tgt, 0.0)

        prod = pred * tgt            # intersection contribution
        both = pred + tgt            # union contribution (one reduce instead of two)

        # Sublane fold to (1, L) partials (VPU adds + one small in-vreg reduce);
        # the cross-lane reduce over L happens once, in the wrapper.
        inter_ref[...] += jnp.sum(prod, axis=0, keepdims=True)[None, None]
        union_ref[...] += jnp.sum(both, axis=0, keepdims=True)[None, None]

    if ragged:
        # Gate the masking to the single ragged block (static python bool), so
        # the hot path stays mask-free and under the HBM roofline.
        last = pl.num_programs(2) - 1

        @pl.when(s == last)
        def _():
            accumulate(True)

        @pl.when(s != last)
        def _():
            accumulate(False)
    else:
        accumulate(False)


def binary_dice_loss(inputs, target, weight=None, softmax=False, one_hot=False,
                     max_block_bytes=None):
    """inputs, target: arrays of shape [B, C, H, W]. Returns scalar loss."""
    B, C, H, W = inputs.shape

    if softmax:
        inputs = jax.nn.softmax(inputs, axis=1)
    if one_hot:
        # target: [B, 1, H, W] class ids -> [B, C, H, W] one-hot (plain JAX, tiny).
        target = (target == jnp.arange(C, dtype=target.dtype).reshape(1, C, 1, 1)
                  ).astype(inputs.dtype)

    assert inputs.shape == target.shape, "predict & target shape do not match"

    hw = H * W
    # FREE contiguous reshape (no transpose, no pad, no extra HBM pass).
    if hw % LANES == 0:
        R, L = hw // LANES, LANES          # fully lane-dense layout
    else:
        R, L = H, W                        # fall back to W as the lane axis
    x = inputs.reshape(B, C, R, L)
    t = target.reshape(B, C, R, L)

    x_item = jnp.dtype(x.dtype).itemsize
    t_item = jnp.dtype(t.dtype).itemsize
    max_item = max(x_item, t_item)

    # ~8 MiB of data per input per block: per-step overhead amortized to a few
    # percent on all generations, and 2 inputs x 2 pipeline buffers x 8 MiB =
    # 32 MiB stays inside v7x's 64 MiB per-core VMEM (v5e/v6e have 128 MiB).
    target_bytes = 8 << 20
    if max_block_bytes is not None:
        target_bytes = int(max_block_bytes)

    max_rows = max(SUBLANES, target_bytes // (L * max_item))
    if R <= max_rows:
        tr, S, ragged = R, 1, False            # whole (b, c) slice in one block
    else:
        tr = max(SUBLANES, (max_rows // SUBLANES) * SUBLANES)
        S = pl.cdiv(R, tr)
        ragged = (R % tr) != 0
    tail_rows = R - (S - 1) * tr               # rows valid in the last block

    kernel = functools.partial(_dice_partial_kernel, tail_rows=tail_rows, ragged=ragged)

    block_bytes = tr * L * (x_item + t_item)   # one pipeline buffer per input
    vmem_limit = int(min(max(2 * block_bytes + (8 << 20), 32 << 20), 48 << 20))

    inter_p, union_p = pl.pallas_call(
        kernel,
        out_shape=(
            jax.ShapeDtypeStruct((C, B, 1, L), jnp.float32),
            jax.ShapeDtypeStruct((C, B, 1, L), jnp.float32),
        ),
        grid_spec=pltpu.PrefetchScalarGridSpec(
            num_scalar_prefetch=0,
            grid=(C, B, S),
            in_specs=[
                pl.BlockSpec((1, 1, tr, L), lambda c, b, s: (b, c, s, 0)),
                pl.BlockSpec((1, 1, tr, L), lambda c, b, s: (b, c, s, 0)),
            ],
            out_specs=[
                pl.BlockSpec((1, 1, 1, L), lambda c, b, s: (c, b, 0, 0)),
                pl.BlockSpec((1, 1, 1, L), lambda c, b, s: (c, b, 0, 0)),
            ],
        ),
        compiler_params=pltpu.CompilerParams(
            dimension_semantics=("parallel", "parallel", "arbitrary"),
            vmem_limit_bytes=vmem_limit,
        ),
    )(x, t)

    # Tiny final reduction + dice formula in plain JAX (C * B * L elements).
    inter = inter_p.sum(axis=(1, 2, 3))        # (C,)
    union = union_p.sum(axis=(1, 2, 3))        # (C,)
    dice = 2.0 * (inter + SMOOTH) / (union + SMOOTH)
    per_class = 1.0 - dice

    if weight is None:
        w = jnp.ones((C,), jnp.float32)
    else:
        w = jnp.asarray(weight, jnp.float32)
    return jnp.sum(per_class * w) / C


def _reference(inputs, target, weight=None):
    # Pure-JAX reference matching the PyTorch loop exactly.
    n_classes = inputs.shape[1]
    if weight is None:
        weight = [1.0] * n_classes
    loss = 0.0
    for i in range(n_classes):
        pred = jnp.clip(inputs[:, i].astype(jnp.float32), SMOOTH, 1.0 - SMOOTH)
        tgt = target[:, i].astype(jnp.float32)
        inter = jnp.sum(pred * tgt)
        union = jnp.sum(pred) + jnp.sum(tgt)
        dice = 2.0 * (inter + SMOOTH) / (union + SMOOTH)
        loss = loss + (1.0 - dice) * weight[i]
    return loss / n_classes


def _check(key, B, C, H, W, dtype=jnp.float32, tol=1e-5, **kwargs):
    k1, k2 = jax.random.split(key)
    inputs = jax.nn.sigmoid(jax.random.normal(k1, (B, C, H, W))).astype(dtype)
    target = (jax.random.uniform(k2, (B, C, H, W)) > 0.5).astype(jnp.float32)
    loss = jax.block_until_ready(binary_dice_loss(inputs, target, **kwargs))
    ref = jax.block_until_ready(_reference(inputs, target))
    assert jnp.allclose(loss, ref, atol=tol, rtol=tol), (B, C, H, W, float(loss), float(ref))


if __name__ == "__main__":
    key = jax.random.PRNGKey(0)
    k1, k2, k3, k4 = jax.random.split(key, 4)

    # Lane-dense path (H*W % 128 == 0), single spatial block per (c, b).
    _check(k1, 2, 4, 16, 16)
    # Fallback (H, W) layout path (H*W % 128 != 0) with a single class
    # (B-parallel accumulators keep both v7x cores busy even for C == 1).
    _check(k2, 2, 1, 15, 15)
    # Multi-block reduction with a ragged (pl.when-gated, masked) tail block.
    _check(k3, 2, 3, 48, 48, max_block_bytes=4096)
    # bf16 activations streamed natively, f32 accumulation in-kernel.
    _check(k4, 2, 2, 32, 32, dtype=jnp.bfloat16, tol=1e-4)

    print("KERNEL_OK")
</pallas_src>

<mosaic_0001>
module attributes {stable_mosaic.version = 11 : i64} {
  func.func @_dice_partial_kernel(%arg0: i32, %arg1: i32, %arg2: i32, %arg3: memref<1x1x2x128xf32, #tpu.memory_space<vmem>>, %arg4: memref<1x1x2x128xf32, #tpu.memory_space<vmem>>, %arg5: memref<1x1x1x128xf32, #tpu.memory_space<vmem>>, %arg6: memref<1x1x1x128xf32, #tpu.memory_space<vmem>>) attributes {dimension_semantics = [#tpu.dimension_semantics<parallel>, #tpu.dimension_semantics<parallel>, #tpu.dimension_semantics<arbitrary>], iteration_bounds = array<i64: 4, 2, 1>, scalar_prefetch = 0 : i64, scratch_operands = 0 : i64, tpu.core_type = #tpu.core_type<tc>, window_params = [{transform_indices = @transform_0, window_bounds = array<i64: 1, 1, 2, 128>}, {transform_indices = @transform_1, window_bounds = array<i64: 1, 1, 2, 128>}, {transform_indices = @transform_2, window_bounds = array<i64: 1, 1, 1, 128>}, {transform_indices = @transform_3, window_bounds = array<i64: 1, 1, 1, 128>}]} {
    %c0_i32 = arith.constant 0 : i32
    %0 = arith.cmpi eq, %arg2, %c0_i32 : i32
    %1 = arith.extui %0 : i1 to i32
    %c0_i32_0 = arith.constant 0 : i32
    %2 = arith.cmpi ne, %1, %c0_i32_0 : i32
    scf.if %2 {
      %cst_27 = arith.constant 0.000000e+00 : f32
      %25 = vector.broadcast %cst_27 : f32 to vector<1x1x1x128xf32>
      %c0_28 = arith.constant 0 : index
      %c0_29 = arith.constant 0 : index
      %c0_30 = arith.constant 0 : index
      %c0_31 = arith.constant 0 : index
      %26 = vector.load %arg5[%c0_28, %c0_29, %c0_30, %c0_31] : memref<1x1x1x128xf32, #tpu.memory_space<vmem>>, vector<1x1x1x128xf32>
      tpu.vector_store %arg5[%c0_28, %c0_29, %c0_30, %c0_31], %25 {strides = array<i32>} : memref<1x1x1x128xf32, #tpu.memory_space<vmem>>, vector<1x1x1x128xf32>,
      %cst_32 = arith.constant 0.000000e+00 : f32
      %27 = vector.broadcast %cst_32 : f32 to vector<1x1x1x128xf32>
      %c0_33 = arith.constant 0 : index
      %c0_34 = arith.constant 0 : index
      %c0_35 = arith.constant 0 : index
      %c0_36 = arith.constant 0 : index
      %28 = vector.load %arg6[%c0_33, %c0_34, %c0_35, %c0_36] : memref<1x1x1x128xf32, #tpu.memory_space<vmem>>, vector<1x1x1x128xf32>
      tpu.vector_store %arg6[%c0_33, %c0_34, %c0_35, %c0_36], %27 {strides = array<i32>} : memref<1x1x1x128xf32, #tpu.memory_space<vmem>>, vector<1x1x1x128xf32>,
    } else {
    }
    %c0 = arith.constant 0 : index
    %c0_1 = arith.constant 0 : index
    %c0_2 = arith.constant 0 : index
    %c0_3 = arith.constant 0 : index
    %3 = vector.load %arg3[%c0, %c0_1, %c0_2, %c0_3] : memref<1x1x2x128xf32, #tpu.memory_space<vmem>>, vector<1x1x2x128xf32>
    %4 = vector.shape_cast %3 : vector<1x1x2x128xf32> to vector<2x128xf32>
    %c0_4 = arith.constant 0 : index
    %c0_5 = arith.constant 0 : index
    %c0_6 = arith.constant 0 : index
    %c0_7 = arith.constant 0 : index
    %5 = vector.load %arg4[%c0_4, %c0_5, %c0_6, %c0_7] : memref<1x1x2x128xf32, #tpu.memory_space<vmem>>, vector<1x1x2x128xf32>
    %6 = vector.shape_cast %5 : vector<1x1x2x128xf32> to vector<2x128xf32>
    %cst = arith.constant 1.000000e-10 : f32
    %cst_8 = arith.constant 1.000000e+00 : f32
    %7 = vector.broadcast %cst : f32 to vector<2x128xf32>
    %8 = arith.maximumf %7, %4 : vector<2x128xf32>
    %9 = vector.broadcast %cst_8 : f32 to vector<2x128xf32>
    %10 = arith.minimumf %9, %8 : vector<2x128xf32>
    %11 = arith.mulf %10, %6 : vector<2x128xf32>
    %12 = arith.addf %10, %6 : vector<2x128xf32>
    %c0_9 = arith.constant 0 : index
    %c0_10 = arith.constant 0 : index
    %c0_11 = arith.constant 0 : index
    %c0_12 = arith.constant 0 : index
    %13 = vector.load %arg5[%c0_9, %c0_10, %c0_11, %c0_12] : memref<1x1x1x128xf32, #tpu.memory_space<vmem>>, vector<1x1x1x128xf32>
    %cst_13 = arith.constant dense<0.000000e+00> : vector<128xf32>
    %14 = vector.multi_reduction <add>, %11, %cst_13 [0] : vector<2x128xf32> to vector<128xf32>
    %15 = vector.shape_cast %14 : vector<128xf32> to vector<1x128xf32>
    %16 = vector.shape_cast %15 : vector<1x128xf32> to vector<1x1x1x128xf32>
    %17 = arith.addf %13, %16 : vector<1x1x1x128xf32>
    %c0_14 = arith.constant 0 : index
    %c0_15 = arith.constant 0 : index
    %c0_16 = arith.constant 0 : index
    %c0_17 = arith.constant 0 : index
    %18 = vector.load %arg5[%c0_14, %c0_15, %c0_16, %c0_17] : memref<1x1x1x128xf32, #tpu.memory_space<vmem>>, vector<1x1x1x128xf32>
    tpu.vector_store %arg5[%c0_14, %c0_15, %c0_16, %c0_17], %17 {strides = array<i32>} : memref<1x1x1x128xf32, #tpu.memory_space<vmem>>, vector<1x1x1x128xf32>,
    %c0_18 = arith.constant 0 : index
    %c0_19 = arith.constant 0 : index
    %c0_20 = arith.constant 0 : index
    %c0_21 = arith.constant 0 : index
    %19 = vector.load %arg6[%c0_18, %c0_19, %c0_20, %c0_21] : memref<1x1x1x128xf32, #tpu.memory_space<vmem>>, vector<1x1x1x128xf32>
    %cst_22 = arith.constant dense<0.000000e+00> : vector<128xf32>
    %20 = vector.multi_reduction <add>, %12, %cst_22 [0] : vector<2x128xf32> to vector<128xf32>
    %21 = vector.shape_cast %20 : vector<128xf32> to vector<1x128xf32>
    %22 = vector.shape_cast %21 : vector<1x128xf32> to vector<1x1x1x128xf32>
    %23 = arith.addf %19, %22 : vector<1x1x1x128xf32>
    %c0_23 = arith.constant 0 : index
    %c0_24 = arith.constant 0 : index
    %c0_25 = arith.constant 0 : index
    %c0_26 = arith.constant 0 : index
    %24 = vector.load %arg6[%c0_23, %c0_24, %c0_25, %c0_26] : memref<1x1x1x128xf32, #tpu.memory_space<vmem>>, vector<1x1x1x128xf32>
    tpu.vector_store %arg6[%c0_23, %c0_24, %c0_25, %c0_26], %23 {strides = array<i32>} : memref<1x1x1x128xf32, #tpu.memory_space<vmem>>, vector<1x1x1x128xf32>,
    return
  }
  func.func @transform_0(%arg0: i32, %arg1: i32, %arg2: i32) -> (i32, i32, i32, i32) {
    %c0_i32 = arith.constant 0 : i32
    %c0_i32_0 = arith.constant 0 : i32
    return %arg1, %arg0, %arg2, %c0_i32 : i32, i32, i32, i32
  }
  func.func @transform_1(%arg0: i32, %arg1: i32, %arg2: i32) -> (i32, i32, i32, i32) {
    %c0_i32 = arith.constant 0 : i32
    %c0_i32_0 = arith.constant 0 : i32
    return %arg1, %arg0, %arg2, %c0_i32 : i32, i32, i32, i32
  }
  func.func @transform_2(%arg0: i32, %arg1: i32, %arg2: i32) -> (i32, i32, i32, i32) {
    %c0_i32 = arith.constant 0 : i32
    %c0_i32_0 = arith.constant 0 : i32
    %c0_i32_1 = arith.constant 0 : i32
    return %arg0, %arg1, %c0_i32, %c0_i32_0 : i32, i32, i32, i32
  }
  func.func @transform_3(%arg0: i32, %arg1: i32, %arg2: i32) -> (i32, i32, i32, i32) {
    %c0_i32 = arith.constant 0 : i32
    %c0_i32_0 = arith.constant 0 : i32
    %c0_i32_1 = arith.constant 0 : i32
    return %arg0, %arg1, %c0_i32, %c0_i32_0 : i32, i32, i32, i32
  }
}

</mosaic_0001>

<bundles_post_ra>
// kernel: tpu_custom_call.1
= control target key start
LH: loop header
LB: loop body
LE: loop exit
PB: predicated region body
PF: predicated region fallthrough
CT: control target
= control target key end

     0   :  { %s1094_s0 = inlined_call_operand.hbm [shape: f32[2,4,2,128], index: 0, kind: input, shape index: {}]   ;;  %s1095_s1 = inlined_call_operand.hbm [shape: f32[2,4,2,128], index: 1, kind: input, shape index: {}]   ;;  %s1096_s2 = inlined_call_operand.hbm [shape: f32[4,2,1,128], index: 2, kind: output, shape index: {0}]   ;;  %s1097_s3 = inlined_call_operand.hbm [shape: f32[4,2,1,128], index: 3, kind: output, shape index: {1}]  }
   0x1   :  { %1102 = sst [smem:[#allocation14_spill]] %s1094_s0 }
   0x2   :  { %9 = vsyncpa [#allocation3], 0 }
   0x3   :  { %11 = vsyncpa [#allocation3 + $0x1], 0 }
   0x4   :  { %12 = vsyncpa [#allocation6], 0 }
   0x5   :  { %14 = vsyncpa [#allocation6 + $0x1], 0 }
   0x6   :  { %15 = vsyncpa [#allocation4], 0 }
   0x7   :  { %17 = vsyncpa [#allocation4 + $0x1], 0 }
   0x8   :  { %18 = vsyncpa [#allocation9], 0 }
   0x9   :  { %20 = vsyncpa [#allocation9 + $0x1], 0  ;;  %s806_s12 = smov 0   ;;  %s808_s13 = smov 0  }
   0xa   :  { %s810_s14 = smov 0   ;;  %s812_s15 = smov 0  }
   0xb   :  { %s814_s16 = smov 0   ;;  %s816_s17 = smov 0  }
   0xc   :  { %s818_s18 = smov 0   ;;  %s820_s19 = smov 0  }
   0xd LB: > { %s477_s20 = sadd.s32 4294967295, %s779_s19   ;;  %s478_s21 = sadd.s32 4294967294, %s779_s19   ;;  %s779_s19 = sphi %s820_s19, %s26_s19   ;;  %s775_s18 = sphi %s818_s18, %s1124_s18   ;;  %s771_s17 = sphi %s816_s17, %s1123_s17   ;;  %s767_s16 = sphi %s814_s16, %s1122_s16   ;;  %s763_s15 = sphi %s812_s15, %s1121_s15   ;;  %s759_s14 = sphi %s810_s14, %s1120_s14   ;;  %s755_s13 = sphi %s808_s13, %s1119_s13   ;;  %s751_s12 = sphi %s806_s12, %s1118_s12  }
   0xe   : > { %s41_s22 = sadd.s32 1, %s771_s17  ;;  %s45_s23 = sadd.s32 1, %s775_s18 }
   0xf   : > { %p43_p0 = scmp.ge.s32.totalorder %s41_s22, 2  ;;  %s56_s24 = sadd.s32 1, %s759_s14 }
  0x10   : > { %p63_p1 = scmp.ne.s32.totalorder %s759_s14, %s755_s13  ;;  %p64_p2 = scmp.eq.s32.totalorder %s779_s19, 0 }
  0x11   : > { %s1126_s22 = smov (%p43_p0, %s41_s22), 0  ;;  %s1128_s23 = smov (!%p43_p0, %s45_s23), %s775_s18 }
  0x12   : > { %s49_s25 = ssub.s32 %s771_s17, %s1126_s22  ;;  %p859_p3 = por %p64_p2, %p63_p1 }
  0x13   : > { %p47_p4 = scmp.ge.s32.totalorder %s1128_s23, 4  ;;  %p69_p5 = scmp.ne.s32.totalorder %s755_s13, %s751_s12 }
  0x14   : > { %p70_p6 = scmp.eq.s32.totalorder %s477_s20, 0  ;;  %p125_p7 = scmp.eq.s32.totalorder %s477_s20, 7 }
  0x15   : > { %s1130_s23 = smov (%p47_p4, %s1128_s23), 0  ;;  %p131_p10 = scmp.eq.s32.totalorder %s478_s21, 7 }
  0x16   : > { %p867_p8 = por %p70_p6, %p69_p5  ;;  %p871_p9 = por %p125_p7, %p63_p1 }
  0x17   : > { %s50_s29 = ssub.s32 %s775_s18, %s1130_s23  ;;  %p877_p12 = por %p131_p10, %p69_p5 }
  0x18   : > { %s1104_s27 = scalar_select %p867_p8, 1, 0 }
  0x19   : > { %s1105_s28 = scalar_select %p871_p9, 1, 0 }
  0x1a   : > { %s51_s30 = sor.u32 %s50_s29, %s49_s25  ;;  %p518_p13 = scmp.lt.s32.totalorder %s779_s19, 8 }
  0x1b   : > { %p54_p11 = scmp.eq.s32.totalorder %s51_s30, 0  ;;  %s883_s5 = sand.u32 1, %s759_s14  }
  0x1c   : > { %s1106_s4 = scalar_select %p877_p12, 1, 0 }
  0x1d   : > { %s886_s6 = scalar_select %p54_p11, %s759_s14, %s56_s24  }
  0x1e   : > { %s1098_s7 = sshll.u32 %s883_s5, 1  ;;  %s482_s8 = sshll.u32 %s771_s17, 2 }
  0x1f   : > { %s891_s9 = sadd.s32 %s775_s18, %s482_s8  ;;  %s183_s10 = scalar_lea.vmem [#allocation2], %s1098_s7 }
  0x20   : > { %s193_s11 = sshll.u32 %s183_s10, 4  ;;  %s1099_s20 = sshll.u32 %s891_s9, 5  ;;  %s896_s11 = int_to_ptr.vmem [resolvable:$true] %s193_s11 }
  0x21   : > { %s1107_s0 = sld [smem:[#allocation14_spill]]  ;;  %p907_p0 = pnand %p518_p13, %p859_p3 }
  0x22   : > { %s180_s30 = scalar_lea.sflag [#allocation3], %s883_s5 }
  0x23   : > { %p587_p5 = pneg %p907_p0 }
  0x27   : > { %s903_s29 = scalar_lea.hbm %s1107_s0, %s1099_s20  ;;  %s590_s21 = scalar_lea.hbm %s1107_s0, 256 }
  0x28   : > { %s585_s8 = scalar_lea.hbm %s903_s29, 32  ;;  %p591_p3 = scmp.lt.u32.totalorder %s903_s29, %s1107_s0 }
  0x29   : > { %p586_p4 = scmp.ne.s32.totalorder %s903_s29, %s585_s8  ;;  %p592_p10 = scmp.lt.u32.totalorder %s590_s21, %s585_s8 }
  0x2a   : > { %p594_p13 = scmp.lt.u32.totalorder %s585_s8, %s903_s29 }
  0x2b   : > { %p588_p6 = pnand %p587_p5, %p586_p4  ;;  %p593_p11 = por %p592_p10, %p591_p3 }
  0x2d   : > { %p589_p7 = pneg %p588_p6  ;;  %p595_p1 = por %p594_p13, %p593_p11 }
  0x2f   : > { %p596_p2 = pnand %p595_p1, %p589_p7 }
  0x31   : > { %599 = shalt.err (!%p596_p2)
}
  0x32   : > { %s600_s20 = scalar_lea.vmem %s896_s11, 32  ;;  %s781_s26 = smov [#allocation2]  }
  0x33   : > { %p601_p4 = scmp.ne.s32.totalorder %s896_s11, %s600_s20  ;;  %s605_s10 = sshll.u32 %s781_s26, 4  ;;  %s606_s10 = int_to_ptr.vmem [resolvable:$false] %s605_s10 }
  0x34   : > { %s607_s7 = scalar_lea.vmem %s606_s10, 64  ;;  %p608_p9 = scmp.lt.s32.totalorder %s896_s11, %s606_s10 }
  0x35   : > { %p603_p6 = pnand %p601_p4, %p587_p5  ;;  %p609_p3 = scmp.lt.s32.totalorder %s607_s7, %s600_s20 }
  0x37   : > { %p604_p12 = pneg %p603_p6  ;;  %p610_p10 = por %p609_p3, %p608_p9 }
  0x39   : > { %p611_p11 = pnand %p610_p10, %p604_p12 }
  0x3b   : > { %614 = shalt.err (!%p611_p11)
}
  0x3c   : > { %507 = dma.hbm_to_vmem [thread:$0]  (!%p907_p0), %s903_s29, 32, %s896_s11, %s180_s30  }
  0x3d   : > { %p1109_p1 = scmp.lt.s32.totalorder %s779_s19, 9  ;;  %p1110_p2 = scmp.ge.s32.totalorder %s779_s19, 1 }
  0x3e   : > { %s1112_s20 = sshll.u32 %s891_s9, 5  ;;  %s1113_s10 = sshll.u32 %s883_s5, 1 }
  0x3f   : > { %p943_p7 = pnand %p1110_p2, %p1109_p1  ;;  %s952_s26 = scalar_lea.hbm %s1095_s1, %s1112_s20 }
  0x40   : > { %s204_s7 = scalar_lea.vmem [#allocation5], %s1113_s10  ;;  %s201_s11 = scalar_lea.sflag [#allocation6], %s883_s5 }
  0x41   : > { %s1111_s8 = scalar_select %p943_p7, 1, 0 }
  0x42   : > { %s214_s0 = sshll.u32 %s204_s7, 4  ;;  %s615_s29 = scalar_lea.hbm %s952_s26, 32  ;;  %s215_s0 = int_to_ptr.vmem [resolvable:$true] %s214_s0 }
  0x43   : > { %p616_p9 = scmp.ne.s32.totalorder %s952_s26, %s615_s29  ;;  %s620_s20 = scalar_lea.hbm %s1095_s1, 256 }
  0x44   : > { %p621_p4 = scmp.lt.u32.totalorder %s952_s26, %s1095_s1  ;;  %p622_p6 = scmp.lt.u32.totalorder %s620_s20, %s615_s29 }
  0x45   : > { %p618_p12 = pnand %p616_p9, %p587_p5  ;;  %p624_p10 = scmp.lt.u32.totalorder %s615_s29, %s952_s26 }
  0x46   : > { %p623_p3 = por %p622_p6, %p621_p4 }
  0x47   : > { %p619_p13 = pneg %p618_p12 }
  0x48   : > { %p625_p11 = por %p624_p10, %p623_p3 }
  0x4a   : > { %p626_p1 = pnand %p625_p11, %p619_p13 }
  0x4c   : > { %629 = shalt.err (!%p626_p1)
}
  0x4d   : > { %s630_s5 = scalar_lea.vmem %s215_s0, 32  ;;  %s782_s10 = smov [#allocation5]  }
  0x4e   : > { %p631_p2 = scmp.ne.s32.totalorder %s215_s0, %s630_s5  ;;  %s635_s7 = sshll.u32 %s782_s10, 4  ;;  %s636_s7 = int_to_ptr.vmem [resolvable:$false] %s635_s7 }
  0x4f   : > { %s637_s9 = scalar_lea.vmem %s636_s7, 64  ;;  %p638_p8 = scmp.lt.s32.totalorder %s215_s0, %s636_s7 }
  0x50   : > { %p633_p9 = pnand %p631_p2, %p587_p5  ;;  %p639_p7 = scmp.lt.s32.totalorder %s637_s9, %s630_s5 }
  0x52   : > { %p634_p12 = pneg %p633_p9  ;;  %p640_p4 = por %p639_p7, %p638_p8 }
  0x54   : > { %p641_p6 = pnand %p640_p4, %p634_p12 }
  0x56   : > { %644 = shalt.err (!%p641_p6)
}
  0x57   : > { %510 = dma.hbm_to_vmem [thread:$0]  (!%p907_p0), %s952_s26, 32, %s215_s0, %s201_s11  }
  0x58   : > { %p1114_p13 = scmp.ne.s32.totalorder %s1111_s8, 0 }
  0x59   : > { %s979_s29 = sand.u32 (!%p1114_p13), 1, %s755_s13   ;;  %p1115_p5 = scmp.ne.s32.totalorder (!%p1114_p13), %s1104_s27, 0 }
  0x5a   : > { %223 = sbr.rel (%p1114_p13) target bundleno = 159 (0x9f), region = 28  ;;  %s488_s30 = sshll.u32 (!%p1114_p13), %s979_s29, 1 }
  0x5b   : > { %s226_s20 = scalar_lea.sflag (!%p1114_p13), [#allocation3], %s979_s29  ;;  %s229_s21 = scalar_lea.vmem (!%p1114_p13), [#allocation2], %s488_s30 }
  0x61   : > { %734 = dma.done.wait (%p1115_p5), %s226_s20, 32  }
  0x62   : > { %736 = vsyncadd (%p1115_p5), %s226_s20, 4294967264  ;;  %s235_s0 = scalar_lea.sflag [#allocation6], %s979_s29  ;;  %s238_s24 = scalar_lea.vmem [#allocation5], %s488_s30 }
  0x63   : > { %738 = dma.done.wait (%p1115_p5), %s235_s0, 32  }
  0x64   : > { %740 = vsyncadd (%p1115_p5), %s235_s0, 4294967264  ;;  %s993_s8 = scalar_lea.vmem [#allocation7], %s979_s29  ;;  %v783_v0 = vmov 0.0   ;;  %s997_s26 = scalar_lea.vmem [#allocation8], %s979_s29  ;;  %v275_v1 = vld [vmem:[%s229_s21] sm:$0x3] }
  0x65   : > { %273 = vst [vmem:[%s993_s8] sm:$0x1] %v783_v0  ;;  %274 = vst [vmem:[%s997_s26] sm:$0x1] %v783_v0  ;;  %v277_v2 = vmax.f32 %v275_v1, 1e-10  ;;  %v276_v3 = vld [vmem:[%s238_s24] sm:$0x3] }
  0x66   : > { %vm282_vm0 = vcmask 1041408   ;;  %s490_s27 = sshll.u32 %s767_s16, 1  ;;  %s321_s25 = sshll.u32 %s993_s8, 4  ;;  %s1006_s25 = int_to_ptr.vmem [resolvable:$true] %s321_s25 }
  0x67   : > { %v278_v4 = vmin.f32 %v277_v2, 1.0  ;;  %s317_s11 = sadd.s32 %s763_s15, %s490_s27  ;;  %s336_s10 = sshll.u32 %s997_s26, 4  ;;  %s1018_s10 = int_to_ptr.vmem [resolvable:$true] %s336_s10 }
  0x68   : > { %s491_s5 = sshll.u32 %s317_s11, 4  ;;  %s303_s21 = scalar_lea.sflag [#allocation4], %s979_s29 }
  0x69   : > { %v279_v5 = vmul.f32 %v278_v4, %v276_v3  ;;  %v280_v6 = vadd.f32 %v278_v4, %v276_v3  ;;  %s1011_s7 = scalar_lea.hbm %s1096_s2, %s491_s5  ;;  %s1016_s20 = scalar_lea.hbm %s1097_s3, %s491_s5 }
  0x6a   : > { %s645_s0 = scalar_lea.vmem %s1006_s25, 16  ;;  %p1116_p0 = scmp.ne.s32.totalorder %s1105_s28, 0 }
  0x6b   : > { %v283_v7 = vsel %vm282_vm0, %v279_v5, 0.0  ;;  %v293_v8 = vsel %vm282_vm0, %v280_v6, 0.0  ;;  %p646_p8 = scmp.ne.s32.totalorder %s1006_s25, %s645_s0  ;;  %s784_s24 = smov [#allocation7]  }
  0x6c   : > { %v284_v9 = vrot.slane %v283_v7, 4  ;;  %v294_v10 = vrot.slane %v293_v8, 4  ;;  %v281_v19 = vld [vmem:[%s993_s8] sm:$0x1]  ;;  %s649_s27 = sshll.u32 %s784_s24, 4  ;;  %s650_s27 = int_to_ptr.vmem [resolvable:$false] %s649_s27 }
  0x6d   : > { %v292_v20 = vld [vmem:[%s997_s26] sm:$0x1]  ;;  %p647_p7 = pnand %p646_p8, %p1116_p0  ;;  %s651_s11 = scalar_lea.vmem %s650_s27, 32 }
  0x6e   : > { %v285_v11 = vadd.f32 %v284_v9, %v283_v7  ;;  %v295_v12 = vadd.f32 %v294_v10, %v293_v8  ;;  %p652_p10 = scmp.lt.s32.totalorder %s1006_s25, %s650_s27  ;;  %p653_p11 = scmp.lt.s32.totalorder %s651_s11, %s645_s0 }
  0x6f   : > { %p648_p3 = pneg %p647_p7 }
  0x70   : > { %v286_v13 = vrot.slane %v285_v11, 2  ;;  %v296_v14 = vrot.slane %v295_v12, 2  ;;  %p654_p1 = por %p653_p11, %p652_p10 }
  0x72   : > { %v287_v15 = vadd.f32 %v286_v13, %v285_v11  ;;  %v297_v16 = vadd.f32 %v296_v14, %v295_v12  ;;  %p655_p2 = pnand %p654_p1, %p648_p3 }
  0x74   : > { %v288_v17 = vrot.slane %v287_v15, 1  ;;  %v298_v18 = vrot.slane %v297_v16, 1 }
  0x76   : > { %v289_v21 = vadd.f32 %v288_v17, %v287_v15  ;;  %v299_v22 = vadd.f32 %v298_v18, %v297_v16 }
  0x78   : > { %v290_v23 = vadd.f32 %v289_v21, %v281_v19  ;;  %v300_v24 = vadd.f32 %v299_v22, %v292_v20 }
  0x7a   : > { %291 = vst [vmem:[%s993_s8] sm:$0x1] %v290_v23  ;;  %301 = vst [vmem:[%s997_s26] sm:$0x1] %v300_v24 }
  0x7b   : > { %658 = shalt.err (!%p655_p2)
}
  0x7c   : > { %s659_s8 = scalar_lea.hbm %s1011_s7, 16  ;;  %s663_s15 = scalar_lea.hbm %s1096_s2, 128 }
  0x7d   : > { %p660_p9 = scmp.ne.s32.totalorder %s1011_s7, %s659_s8  ;;  %p664_p6 = scmp.lt.u32.totalorder %s1011_s7, %s1096_s2 }
  0x7e   : > { %p665_p13 = scmp.lt.u32.totalorder %s663_s15, %s659_s8  ;;  %p667_p8 = scmp.lt.u32.totalorder %s659_s8, %s1011_s7 }
  0x7f   : > { %p661_p12 = pnand %p660_p9, %p1116_p0 }
  0x80   : > { %p666_p5 = por %p665_p13, %p664_p6 }
  0x81   : > { %p662_p4 = pneg %p661_p12 }
  0x82   : > { %p668_p7 = por %p667_p8, %p666_p5 }
  0x84   : > { %p669_p3 = pnand %p668_p7, %p662_p4 }
  0x86   : > { %672 = shalt.err (!%p669_p3)
}
  0x87   : > { %500 = dma.vmem_to_hbm [thread:$0]  (%p1116_p0), %s1006_s25, 16, %s1011_s7, %s303_s21  }
  0x88   : > { %s307_s30 = scalar_lea.sflag [#allocation9], %s979_s29  ;;  %s673_s0 = scalar_lea.vmem %s1018_s10, 16 }
  0x89   : > { %p674_p10 = scmp.ne.s32.totalorder %s1018_s10, %s673_s0  ;;  %s785_s24 = smov [#allocation8]  }
  0x8a   : > { %s677_s27 = sshll.u32 %s785_s24, 4  ;;  %s678_s27 = int_to_ptr.vmem [resolvable:$false] %s677_s27 }
  0x8b   : > { %p675_p11 = pnand %p674_p10, %p1116_p0  ;;  %s679_s11 = scalar_lea.vmem %s678_s27, 32 }
  0x8c   : > { %p680_p2 = scmp.lt.s32.totalorder %s1018_s10, %s678_s27  ;;  %p681_p9 = scmp.lt.s32.totalorder %s679_s11, %s673_s0 }
  0x8d   : > { %p676_p1 = pneg %p675_p11 }
  0x8e   : > { %p682_p12 = por %p681_p9, %p680_p2 }
  0x90   : > { %p683_p4 = pnand %p682_p12, %p676_p1 }
  0x92   : > { %686 = shalt.err (!%p683_p4)
}
  0x93   : > { %s687_s29 = scalar_lea.hbm %s1016_s20, 16  ;;  %s691_s21 = scalar_lea.hbm %s1097_s3, 128 }
  0x94   : > { %p688_p6 = scmp.ne.s32.totalorder %s1016_s20, %s687_s29  ;;  %p692_p8 = scmp.lt.u32.totalorder %s1016_s20, %s1097_s3 }
  0x95   : > { %p693_p7 = scmp.lt.u32.totalorder %s691_s21, %s687_s29  ;;  %p695_p10 = scmp.lt.u32.totalorder %s687_s29, %s1016_s20 }
  0x96   : > { %p689_p13 = pnand %p688_p6, %p1116_p0 }
  0x97   : > { %p694_p3 = por %p693_p7, %p692_p8 }
  0x98   : > { %p690_p5 = pneg %p689_p13 }
  0x99   : > { %p696_p11 = por %p695_p10, %p694_p3 }
  0x9b   : > { %p697_p1 = pnand %p696_p11, %p690_p5 }
  0x9d   : > { %700 = shalt.err (!%p697_p1)
}
  0x9e   : > { %501 = dma.vmem_to_hbm [thread:$0]  (%p1116_p0), %s1018_s10, 16, %s1016_s20, %s307_s30  }
  0x9f PF: > { %p519_p2 = scmp.ge.s32.totalorder %s779_s19, 2  ;;  %s348_s5 = sand.u32 1, %s751_s12  }
  0xa0   : > { %p1117_p9 = scmp.ne.s32.totalorder %s1106_s4, 0  ;;  %s349_s15 = scalar_lea.sflag [#allocation4], %s348_s5 }
  0xa2   : > { %p512_p12 = pnand %p519_p2, %p1117_p9 }
  0xa4   : > { %742 = dma.done.wait (!%p512_p12), %s349_s15, 16  }
  0xa5   : > { %744 = vsyncadd (!%p512_p12), %s349_s15, 4294967280  ;;  %s357_s16 = scalar_lea.sflag [#allocation9], %s348_s5 }
  0xa6   : > { %746 = dma.done.wait (!%p512_p12), %s357_s16, 16  }
  0xa7   : > { %748 = vsyncadd (!%p512_p12), %s357_s16, 4294967280  ;;  %s26_s19 = sadd.s32 1, %s779_s19   ;;  %s1118_s12 = smov %s755_s13 }
  0xa8   : > { %p23_p4 = scmp.ge.s32.totalorder %s26_s19, 10   ;;  %s1119_s13 = smov %s759_s14 }
  0xa9   : > { %s1120_s14 = smov %s886_s6  ;;  %s1121_s15 = smov %s771_s17 }
  0xaa   : > { %s1122_s16 = smov %s775_s18  ;;  %s1123_s17 = smov %s1126_s22 }
  0xab   : > { %s1124_s18 = smov %s1130_s23  ;;  %25 = sbr.rel (!%p23_p4) target bundleno = 13 (0xd), region = 107 }
  0xb2   :  { %361 = vsyncpa [#allocation3], 1 }
  0xb3   :  { %363 = vsyncpa [#allocation3 + $0x1], 1 }
  0xb4   :  { %364 = vsyncpa [#allocation6], 1 }
  0xb5   :  { %366 = vsyncpa [#allocation6 + $0x1], 1 }
  0xb6   :  { %367 = vsyncpa [#allocation4], 1 }
  0xb7   :  { %369 = vsyncpa [#allocation4 + $0x1], 1 }
  0xb8   :  { %370 = vsyncpa [#allocation9], 1 }
  0xb9   :  { %372 = vsyncpa [#allocation9 + $0x1], 1 }

</bundles_post_ra>
